<compile_context>
chip_gen: v7x
topology: tpu7x:2x2x1
jax: 0.10.0
libtpu: 0.0.40
codegen_flags: <defaults>
</compile_context>

<pallas_src>
import functools

import jax
import jax.numpy as jnp
from jax.experimental import pallas as pl
from jax.experimental.pallas import tpu as pltpu

_LANE = 128
_SUBLANE = 8


def _rmse_partial_kernel(pred_ref, gt_ref, out_ref, *, rows_valid):
    pi = pl.program_id(0)           # parallel slice (TensorCore split)
    si = pl.program_id(1)           # sequential streaming step (reduction axis)
    steps = pl.num_programs(1)
    block_rows = pred_ref.shape[0]

    # The resident (1, 8, 128) output block doubles as the f32 accumulator.
    @pl.when(si == 0)
    def _init():
        out_ref[...] = jnp.zeros_like(out_ref)

    # Logical (unclamped) block index. The DMA index_map clamps to stay in
    # bounds; tail rows and clamped duplicate blocks are masked below.
    b = pi * steps + si
    row0 = b * block_rows

    d = pred_ref[...].astype(jnp.float32) - gt_ref[...].astype(jnp.float32)
    d2 = d * d

    def _accumulate(vals):
        # Tree-sum the (block_rows, 128) tile down to one (8, 128) vreg with
        # elementwise VPU adds; the reshape does not cross (8, 128) tiles.
        part = jnp.sum(
            vals.reshape(block_rows // _SUBLANE, _SUBLANE, _LANE), axis=0)
        out_ref[...] += part[None, :, :]

    needs_mask = row0 + block_rows > rows_valid

    @pl.when(needs_mask)
    def _tail_or_duplicate():
        row_ids = row0 + jax.lax.broadcasted_iota(
            jnp.int32, (block_rows, _LANE), 0)
        _accumulate(jnp.where(row_ids < rows_valid, d2, 0.0))

    @pl.when(jnp.logical_not(needs_mask))
    def _interior():
        _accumulate(d2)


def _default_n_par():
    """2 slices on dual-TensorCore chips (v7x-class), else 1."""
    try:
        kind = jax.devices()[0].device_kind.lower()
    except Exception:  # pragma: no cover - defensive
        return 1
    if "v7" in kind or "v5p" in kind or "v4" in kind:
        return 2
    return 1


def rmse_loss(pred, gt, *, tile_bytes=4 * 1024 * 1024, n_par=None):
    """sqrt(mean((pred - gt)**2)) computed with a Pallas streaming reduction."""
    assert pred.shape == gt.shape, "pred and gt must have identical shapes"
    n = int(pred.size)
    assert n > 0

    # Stream in native dtype; cast to f32 per-tile inside the kernel.
    p = jnp.asarray(pred).reshape(-1)
    g = jnp.asarray(gt).reshape(-1)

    # Pad to a multiple of one f32 vreg (8 x 128) so every block shape is
    # (8, 128)-aligned; zero padding contributes nothing to the sum of squares.
    pad = (-n) % (_SUBLANE * _LANE)
    if pad:
        p = jnp.pad(p, (0, pad))
        g = jnp.pad(g, (0, pad))

    rows = (n + pad) // _LANE
    p2 = p.reshape(rows, _LANE)
    g2 = g.reshape(rows, _LANE)

    # Dtype-aware tile size: fixed ~tile_bytes per input per step
    # (f32 -> 8192 rows, bf16 -> 16384 rows => ~16 MiB double-buffered input).
    itemsize = max(p2.dtype.itemsize, g2.dtype.itemsize)
    block_rows = max(
        _SUBLANE, (tile_bytes // (_LANE * itemsize)) // _SUBLANE * _SUBLANE)
    if rows <= block_rows:
        block_rows = rows               # single full-extent block

    total_blocks = -(-rows // block_rows)
    if n_par is None:
        n_par = _default_n_par()
    n_par = max(1, min(n_par, total_blocks))
    steps = -(-total_blocks // n_par)

    def in_map(pi, si):
        # Clamp so the DMA never indexes past the array; the kernel masks the
        # rows of tail / clamped (duplicate) blocks so they contribute zero.
        return (jnp.minimum(pi * steps + si, total_blocks - 1), 0)

    # 2x (double buffer) * per-step bytes of both inputs, plus headroom;
    # v5e's default scoped VMEM limit is only 16 MiB, so raise it explicitly.
    in_step_bytes = block_rows * _LANE * (p2.dtype.itemsize + g2.dtype.itemsize)
    vmem_limit = int(min(48 * 1024 * 1024,
                         max(16 * 1024 * 1024,
                             2 * in_step_bytes + 4 * 1024 * 1024)))

    cost = pl.CostEstimate(
        flops=3 * n,
        transcendentals=0,
        bytes_accessed=n * (p2.dtype.itemsize + g2.dtype.itemsize)
        + n_par * _SUBLANE * _LANE * 4,
    )

    partials = pl.pallas_call(
        functools.partial(_rmse_partial_kernel, rows_valid=rows),
        out_shape=jax.ShapeDtypeStruct((n_par, _SUBLANE, _LANE), jnp.float32),
        grid_spec=pltpu.PrefetchScalarGridSpec(
            num_scalar_prefetch=0,
            grid=(n_par, steps),
            in_specs=[
                pl.BlockSpec((block_rows, _LANE), in_map),
                pl.BlockSpec((block_rows, _LANE), in_map),
            ],
            out_specs=pl.BlockSpec((1, _SUBLANE, _LANE),
                                   lambda pi, si: (pi, 0, 0)),
        ),
        compiler_params=pltpu.CompilerParams(
            dimension_semantics=("parallel", "arbitrary"),
            vmem_limit_bytes=vmem_limit,
        ),
        cost_estimate=cost,
    )(p2, g2)

    return jnp.sqrt(jnp.sum(partials, dtype=jnp.float32) / jnp.float32(n))


if __name__ == "__main__":
    key = jax.random.PRNGKey(0)
    k1, k2 = jax.random.split(key)

    # Small NCHW-like shapes consistent with typical RMSELoss usage.
    pred = jax.random.normal(k1, (2, 4, 16, 16), dtype=jnp.float32)
    gt = jax.random.normal(k2, (2, 4, 16, 16), dtype=jnp.float32)

    loss = jax.block_until_ready(rmse_loss(pred, gt))

    # Sanity check against the pure-JAX reference.
    ref = jnp.sqrt(jnp.mean((pred - gt) ** 2))
    assert jnp.allclose(loss, ref, rtol=1e-5, atol=1e-6), (loss, ref)

    print("KERNEL_OK")
</pallas_src>

<mosaic_0001>
module attributes {stable_mosaic.version = 11 : i64} {
  func.func @_rmse_partial_kernel(%arg0: i32, %arg1: i32, %arg2: memref<16x128xf32, #tpu.memory_space<vmem>>, %arg3: memref<16x128xf32, #tpu.memory_space<vmem>>, %arg4: memref<1x8x128xf32, #tpu.memory_space<vmem>>) attributes {dimension_semantics = [#tpu.dimension_semantics<parallel>, #tpu.dimension_semantics<arbitrary>], iteration_bounds = array<i64: 1, 1>, scalar_prefetch = 0 : i64, scratch_operands = 0 : i64, tpu.core_type = #tpu.core_type<tc>, window_params = [{transform_indices = @transform_0, window_bounds = array<i64: 16, 128>}, {transform_indices = @transform_1, window_bounds = array<i64: 16, 128>}, {transform_indices = @transform_2, window_bounds = array<i64: 1, 8, 128>}]} {
    %c0_i32 = arith.constant 0 : i32
    %0 = arith.cmpi eq, %arg1, %c0_i32 : i32
    %1 = arith.extui %0 : i1 to i32
    %c0_i32_0 = arith.constant 0 : i32
    %2 = arith.cmpi ne, %1, %c0_i32_0 : i32
    scf.if %2 {
      %cst = arith.constant 0.000000e+00 : f32
      %17 = vector.broadcast %cst : f32 to vector<1x8x128xf32>
      %c0_8 = arith.constant 0 : index
      %c0_9 = arith.constant 0 : index
      %c0_10 = arith.constant 0 : index
      %18 = vector.load %arg4[%c0_8, %c0_9, %c0_10] : memref<1x8x128xf32, #tpu.memory_space<vmem>>, vector<1x8x128xf32>
      tpu.vector_store %arg4[%c0_8, %c0_9, %c0_10], %17 {strides = array<i32>} : memref<1x8x128xf32, #tpu.memory_space<vmem>>, vector<1x8x128xf32>,
    } else {
    }
    %c1_i32 = arith.constant 1 : i32
    %3 = arith.muli %arg0, %c1_i32 : i32
    %4 = arith.addi %3, %arg1 : i32
    %c16_i32 = arith.constant 16 : i32
    %5 = arith.muli %4, %c16_i32 : i32
    %c0 = arith.constant 0 : index
    %c0_1 = arith.constant 0 : index
    %6 = vector.load %arg2[%c0, %c0_1] : memref<16x128xf32, #tpu.memory_space<vmem>>, vector<16x128xf32>
    %c0_2 = arith.constant 0 : index
    %c0_3 = arith.constant 0 : index
    %7 = vector.load %arg3[%c0_2, %c0_3] : memref<16x128xf32, #tpu.memory_space<vmem>>, vector<16x128xf32>
    %8 = arith.subf %6, %7 : vector<16x128xf32>
    %9 = arith.mulf %8, %8 : vector<16x128xf32>
    %c16_i32_4 = arith.constant 16 : i32
    %10 = arith.addi %5, %c16_i32_4 : i32
    %c16_i32_5 = arith.constant 16 : i32
    %11 = arith.cmpi sgt, %10, %c16_i32_5 : i32
    %12 = arith.extui %11 : i1 to i32
    %c0_i32_6 = arith.constant 0 : i32
    %13 = arith.cmpi ne, %12, %c0_i32_6 : i32
    scf.if %13 {
      %17 = tpu.iota {dimensions = array<i32: 0>} : vector<16x128xi32>
      %18 = vector.broadcast %5 : i32 to vector<16x128xi32>
      %19 = arith.addi %18, %17 : vector<16x128xi32>
      %c16_i32_8 = arith.constant 16 : i32
      %20 = vector.broadcast %c16_i32_8 : i32 to vector<16x128xi32>
      %21 = arith.cmpi slt, %19, %20 : vector<16x128xi32>
      %cst = arith.constant 0.000000e+00 : f32
      %22 = vector.broadcast %cst : f32 to vector<16x128xf32>
      %23 = arith.select %21, %9, %22 : vector<16x128xi1>, vector<16x128xf32>
      %24 = vector.shape_cast %23 : vector<16x128xf32> to vector<2x8x128xf32>
      %cst_9 = arith.constant dense<0.000000e+00> : vector<8x128xf32>
      %25 = vector.multi_reduction <add>, %24, %cst_9 [0] : vector<2x8x128xf32> to vector<8x128xf32>
      %c0_10 = arith.constant 0 : index
      %c0_11 = arith.constant 0 : index
      %c0_12 = arith.constant 0 : index
      %26 = vector.load %arg4[%c0_10, %c0_11, %c0_12] : memref<1x8x128xf32, #tpu.memory_space<vmem>>, vector<1x8x128xf32>
      %27 = vector.shape_cast %25 : vector<8x128xf32> to vector<1x8x128xf32>
      %28 = arith.addf %26, %27 : vector<1x8x128xf32>
      %c0_13 = arith.constant 0 : index
      %c0_14 = arith.constant 0 : index
      %c0_15 = arith.constant 0 : index
      %29 = vector.load %arg4[%c0_13, %c0_14, %c0_15] : memref<1x8x128xf32, #tpu.memory_space<vmem>>, vector<1x8x128xf32>
      tpu.vector_store %arg4[%c0_13, %c0_14, %c0_15], %28 {strides = array<i32>} : memref<1x8x128xf32, #tpu.memory_space<vmem>>, vector<1x8x128xf32>,
    } else {
    }
    %true = arith.constant true
    %14 = arith.xori %11, %true : i1
    %15 = arith.extui %14 : i1 to i32
    %c0_i32_7 = arith.constant 0 : i32
    %16 = arith.cmpi ne, %15, %c0_i32_7 : i32
    scf.if %16 {
      %17 = vector.shape_cast %9 : vector<16x128xf32> to vector<2x8x128xf32>
      %cst = arith.constant dense<0.000000e+00> : vector<8x128xf32>
      %18 = vector.multi_reduction <add>, %17, %cst [0] : vector<2x8x128xf32> to vector<8x128xf32>
      %c0_8 = arith.constant 0 : index
      %c0_9 = arith.constant 0 : index
      %c0_10 = arith.constant 0 : index
      %19 = vector.load %arg4[%c0_8, %c0_9, %c0_10] : memref<1x8x128xf32, #tpu.memory_space<vmem>>, vector<1x8x128xf32>
      %20 = vector.shape_cast %18 : vector<8x128xf32> to vector<1x8x128xf32>
      %21 = arith.addf %19, %20 : vector<1x8x128xf32>
      %c0_11 = arith.constant 0 : index
      %c0_12 = arith.constant 0 : index
      %c0_13 = arith.constant 0 : index
      %22 = vector.load %arg4[%c0_11, %c0_12, %c0_13] : memref<1x8x128xf32, #tpu.memory_space<vmem>>, vector<1x8x128xf32>
      tpu.vector_store %arg4[%c0_11, %c0_12, %c0_13], %21 {strides = array<i32>} : memref<1x8x128xf32, #tpu.memory_space<vmem>>, vector<1x8x128xf32>,
    } else {
    }
    return
  }
  func.func @transform_0(%arg0: i32, %arg1: i32) -> (i32, i32) {
    %c1_i32 = arith.constant 1 : i32
    %0 = arith.muli %arg0, %c1_i32 : i32
    %1 = arith.addi %0, %arg1 : i32
    %c0_i32 = arith.constant 0 : i32
    %2 = arith.minsi %1, %c0_i32 : i32
    %c0_i32_0 = arith.constant 0 : i32
    %c0_i32_1 = arith.constant 0 : i32
    return %2, %c0_i32_0 : i32, i32
  }
  func.func @transform_1(%arg0: i32, %arg1: i32) -> (i32, i32) {
    %c1_i32 = arith.constant 1 : i32
    %0 = arith.muli %arg0, %c1_i32 : i32
    %1 = arith.addi %0, %arg1 : i32
    %c0_i32 = arith.constant 0 : i32
    %2 = arith.minsi %1, %c0_i32 : i32
    %c0_i32_0 = arith.constant 0 : i32
    %c0_i32_1 = arith.constant 0 : i32
    return %2, %c0_i32_0 : i32, i32
  }
  func.func @transform_2(%arg0: i32, %arg1: i32) -> (i32, i32, i32) {
    %c0_i32 = arith.constant 0 : i32
    %c0_i32_0 = arith.constant 0 : i32
    %c0_i32_1 = arith.constant 0 : i32
    return %arg0, %c0_i32, %c0_i32_0 : i32, i32, i32
  }
}

</mosaic_0001>

<bundles_post_ra>
// kernel: tpu_custom_call.1
= control target key start
LH: loop header
LB: loop body
LE: loop exit
PB: predicated region body
PF: predicated region fallthrough
CT: control target
= control target key end

     0   :  { %7 = vsyncpa [#allocation3], 0  ;;  %s256_s0 = inlined_call_operand.hbm [shape: f32[16,128], index: 0, kind: input, shape index: {}]   ;;  %s257_s1 = inlined_call_operand.hbm [shape: f32[16,128], index: 1, kind: input, shape index: {}]   ;;  %s258_s2 = inlined_call_operand.hbm [shape: f32[1,8,128], index: 2, kind: output, shape index: {}]  }
   0x1   :  { %8 = vsyncpa [#allocation6], 0 }
   0x2   :  { %9 = vsyncpa [#allocation4], 0  ;;  %s200_s9 = smov [#allocation2]   ;;  %s128_s13 = scalar_lea.hbm %s256_s0, 256 }
   0x3   :  { %s21_s10 = sshll.u32 %s200_s9, 4  ;;  %p129_p0 = scmp.ne.s32.totalorder %s256_s0, %s128_s13  ;;  %s22_s10 = int_to_ptr.vmem [resolvable:$true] %s21_s10 }
   0x4   :  { %p132_p1 = scmp.lt.u32.totalorder %s128_s13, %s256_s0 }
   0x6   :  { %p134_p2 = pnand %p132_p1, %p129_p0 }
   0x8   :  { %137 = shalt.err (!%p134_p2)
}
   0x9   :  { %s138_s18 = scalar_lea.vmem %s22_s10, 256  ;;  %p143_p4 = scmp.lt.s32.totalorder %s22_s10, %s22_s10 }
   0xa   :  { %p139_p3 = scmp.ne.s32.totalorder %s22_s10, %s138_s18  ;;  %p144_p5 = scmp.lt.s32.totalorder %s138_s18, %s138_s18 }
   0xc   :  { %p145_p6 = por %p144_p5, %p143_p4 }
   0xe   :  { %p146_p7 = pnand %p145_p6, %p139_p3 }
  0x10   :  { %149 = shalt.err (!%p146_p7)
}
  0x11   :  { %s201_s19 = smov 128   ;;  %s202_s20 = smov 8  }
  0x12   :  { %27 = dma.hbm_to_vmem [thread:$0]  %s256_s0, 256, %s22_s10, [#allocation3], %s201_s19, %s201_s19, %s202_s20  }
  0x13   :  { %s203_s23 = smov [#allocation5]   ;;  %s150_s27 = scalar_lea.hbm %s257_s1, 256 }
  0x14   :  { %s39_s24 = sshll.u32 %s203_s23, 4  ;;  %p151_p8 = scmp.ne.s32.totalorder %s257_s1, %s150_s27  ;;  %s40_s24 = int_to_ptr.vmem [resolvable:$true] %s39_s24 }
  0x15   :  { %p154_p9 = scmp.lt.u32.totalorder %s150_s27, %s257_s1 }
  0x17   :  { %p156_p10 = pnand %p154_p9, %p151_p8 }
  0x19   :  { %159 = shalt.err (!%p156_p10)
}
  0x1a   :  { %s160_s4 = scalar_lea.vmem %s40_s24, 256  ;;  %p165_p12 = scmp.lt.s32.totalorder %s40_s24, %s40_s24 }
  0x1b   :  { %p161_p11 = scmp.ne.s32.totalorder %s40_s24, %s160_s4  ;;  %p166_p13 = scmp.lt.s32.totalorder %s160_s4, %s160_s4 }
  0x1d   :  { %p167_p0 = por %p166_p13, %p165_p12 }
  0x1f   :  { %p168_p1 = pnand %p167_p0, %p161_p11 }
  0x21   :  { %171 = shalt.err (!%p168_p1)
}
  0x22   :  { %45 = dma.hbm_to_vmem [thread:$0]  %s257_s1, 256, %s40_s24, [#allocation6], %s201_s19, %s201_s19, %s202_s20  }
  0x23   :  { %194 = dma.done.wait [#allocation3], 256  }
  0x24   :  { %195 = vsyncadd [#allocation3], 4294967040 }
  0x25   :  { %196 = dma.done.wait [#allocation6], 256  }
  0x26   :  { %197 = vsyncadd [#allocation6], 4294967040  ;;  %v67_v0 = vld [vmem:[#allocation2] sm:$0xff]  ;;  %v68_v1 = vld [vmem:[#allocation2 + $0x8] sm:$0xff]  ;;  %s204_s6 = smov [#allocation7]  }
  0x27   :  { %v69_v2 = vld [vmem:[#allocation5] sm:$0xff]  ;;  %v70_v3 = vld [vmem:[#allocation5 + $0x8] sm:$0xff]  ;;  %s108_s7 = sshll.u32 %s204_s6, 4  ;;  %s109_s7 = int_to_ptr.vmem [resolvable:$true] %s108_s7 }
  0x28   :  { %v71_v4 = vsub.f32 %v67_v0, %v69_v2  ;;  %v72_v5 = vsub.f32 %v68_v1, %v70_v3  ;;  %s172_s8 = scalar_lea.vmem %s109_s7, 128  ;;  %p177_p3 = scmp.lt.s32.totalorder %s109_s7, %s109_s7 }
  0x29   :  { %p173_p2 = scmp.ne.s32.totalorder %s109_s7, %s172_s8  ;;  %p178_p4 = scmp.lt.s32.totalorder %s172_s8, %s172_s8 }
  0x2a   :  { %v73_v6 = vmul.f32 %v71_v4, %v71_v4  ;;  %v74_v7 = vmul.f32 %v72_v5, %v72_v5 }
  0x2b   :  { %p179_p5 = por %p178_p4, %p177_p3 }
  0x2c   :  { %v98_v8 = vadd.f32 %v74_v7, %v73_v6 }
  0x2d   :  { %p180_p6 = pnand %p179_p5, %p173_p2 }
  0x2e   :  { %101 = vst [vmem:[#allocation7] sm:$0xff] %v98_v8 }
  0x2f   :  { %183 = shalt.err (!%p180_p6)
}
  0x30   :  { %s184_s10 = scalar_lea.hbm %s258_s2, 128 }
  0x31   :  { %p185_p7 = scmp.ne.s32.totalorder %s258_s2, %s184_s10  ;;  %p188_p8 = scmp.lt.u32.totalorder %s184_s10, %s258_s2 }
  0x33   :  { %p190_p9 = pnand %p188_p8, %p185_p7 }
  0x35   :  { %193 = shalt.err (!%p190_p9)
}
  0x36   :  { %111 = dma.vmem_to_hbm [thread:$0]  %s109_s7, 128, %s258_s2, [#allocation4]  }
  0x37   :  { %198 = dma.done.wait [#allocation4], 128  }
  0x38   :  { %199 = vsyncadd [#allocation4], 4294967168 }
  0x39   :  { %115 = vsyncpa [#allocation3], 1 }
  0x3a   :  { %116 = vsyncpa [#allocation6], 1 }
  0x3b   :  { %117 = vsyncpa [#allocation4], 1 }

</bundles_post_ra>
